<compile_context>
chip_gen: v7x
topology: tpu7x:2x2x1
jax: 0.10.0
libtpu: 0.0.40
codegen_flags: <defaults>
</compile_context>

<pallas_src>
import math
from functools import partial

import jax
import jax.numpy as jnp
from jax import lax
from jax.experimental import pallas as pl
from jax.experimental.pallas import tpu as pltpu


def _cdiv(a, b):
    return -(-a // b)


def _lane(n):
    return 128 * _cdiv(n, 128)


def _vmem_config():
    """Returns (vmem_limit_bytes, per-grid-step block budget, max batch block)."""
    try:
        cap = int(getattr(pltpu.get_tpu_info(), "vmem_capacity_bytes", 0) or 0)
    except Exception:
        cap = 0
    if cap >= 100 * 1024 * 1024:            # v5e / v6e: 128 MiB VMEM per core
        return 96 * 1024 * 1024, 72 * 1024 * 1024, 64
    # v7x (64 MiB / TC) or unknown: stay conservative.
    return 48 * 1024 * 1024, 36 * 1024 * 1024, 32


def _block_vmem_bytes(bb, tb, d_in, dh, d_out, weight_shapes):
    """Rough VMEM footprint of one grid step (f32, double-buffered I/O blocks)."""
    rows = bb * tb * 4                       # bytes per lane-group column
    total = (2 * rows * _lane(d_in)          # u block   (x2 pipeline buffers)
             + 2 * rows * _lane(d_out)       # y block   (x2 pipeline buffers)
             + 4 * rows * _lane(dh)          # p_re / p_im / h_re / h_im scratch
             + 2 * 8 * _cdiv(bb, 8) * _lane(dh) * 4)   # carried state
    for k, n in weight_shapes:
        total += 2 * 8 * _cdiv(k, 8) * _lane(n) * 4
    return total


def _select_blocks(B, T, d_in, dh, d_out, weight_shapes, budget, bb_max):
    if T <= 128:
        TB = 8 * _cdiv(T, 8)
    else:
        TB = 128
    Tp = TB * _cdiv(T, TB)
    Bp = 8 * _cdiv(B, 8)                     # batch padded to a sublane multiple
    BB = 8
    for cand in (64, 32, 16, 8):
        if (cand <= bb_max and Bp % cand == 0 and
                _block_vmem_bytes(cand, TB, d_in, dh, d_out,
                                  weight_shapes) <= budget):
            BB = cand
            break
    # Megacore (v7x): keep >= 2 blocks on the "parallel" batch axis if we can.
    if Bp // BB < 2 and BB > 8:
        BB //= 2
    return BB, Bp, TB, Tp


def _select_unroll(BB, TB, dh):
    state_vregs = _cdiv(BB, 8) * _cdiv(dh, 128)   # vregs per carried operand
    if state_vregs <= 4:
        unroll = 8
    elif state_vregs <= 8:
        unroll = 4
    else:
        unroll = 2
    return max(1, min(unroll, TB))


# --------------------------- fused kernel ------------------------------------
def _make_fused_kernel(num_linear, compute_dtype, unroll):
    f32 = jnp.float32

    def kernel(u_ref, wbre_ref, wbim_ref, lre_ref, lim_ref,
               wcre_ref, wcimn_ref, wd_ref, *rest):
        lin_refs = rest[:2 * num_linear]
        out_ref = rest[2 * num_linear]
        (pre_sc, pim_sc, hre_sc, him_sc, car_re, car_im) = rest[2 * num_linear + 1:]

        TB, BB, d_in = u_ref.shape
        dh = lre_ref.shape[-1]

        # ---- stage A: input projection for the whole (TB, BB) block (MXU) ----
        # TODO(synk): for very small d_in a VPU broadcast-MAC would avoid the
        # lane-padded u tile; the MXU dot is kept for generality.
        u2 = u_ref[...].reshape(TB * BB, d_in).astype(compute_dtype)
        pre_sc[...] = jnp.dot(u2, wbre_ref[...],
                              preferred_element_type=f32).reshape(TB, BB, dh)
        pim_sc[...] = jnp.dot(u2, wbim_ref[...],
                              preferred_element_type=f32).reshape(TB, BB, dh)

        # ---- stage B: elementwise complex LRU recurrence over the block -----
        # The carried state lives in VMEM scratch; this is only correct because
        # the time axis is the innermost ("arbitrary") grid axis.
        @pl.when(pl.program_id(1) == 0)
        def _():
            car_re[...] = jnp.zeros_like(car_re)
            car_im[...] = jnp.zeros_like(car_im)

        lre = jnp.broadcast_to(lre_ref[...], (1, BB, dh))   # hoisted broadcasts
        lim = jnp.broadcast_to(lim_ref[...], (1, BB, dh))

        def step(t, carry):
            hr, hi = carry                                  # (1, BB, dh) f32, dense
            pr = pre_sc[pl.ds(t, 1), :, :]
            pi = pim_sc[pl.ds(t, 1), :, :]
            hr_new = hr * lre - hi * lim + pr
            hi_new = hr * lim + hi * lre + pi
            hre_sc[pl.ds(t, 1), :, :] = hr_new              # dense, unmasked sublanes
            him_sc[pl.ds(t, 1), :, :] = hi_new
            return hr_new, hi_new

        hr, hi = lax.fori_loop(0, TB, step, (car_re[...], car_im[...]),
                               unroll=unroll)
        car_re[...] = hr                  # carry state into the next time block
        car_im[...] = hi

        # ---- stage C: C/D projection + Linear/ReLU head for the block (MXU) --
        hre2 = hre_sc[...].reshape(TB * BB, dh).astype(compute_dtype)
        him2 = him_sc[...].reshape(TB * BB, dh).astype(compute_dtype)
        # y = Re(h @ C^T) + u @ D^T   (imag part of C pre-negated in wrapper)
        y = (jnp.dot(hre2, wcre_ref[...], preferred_element_type=f32)
             + jnp.dot(him2, wcimn_ref[...], preferred_element_type=f32)
             + jnp.dot(u2, wd_ref[...], preferred_element_type=f32))
        for i in range(num_linear):
            w = lin_refs[2 * i][...]
            b = lin_refs[2 * i + 1][...]
            y = jnp.dot(y.astype(compute_dtype), w,
                        preferred_element_type=f32) + b
            if i != num_linear - 1:
                y = jnp.maximum(y, 0.0)
        out_ref[...] = y.reshape(TB, BB, y.shape[-1]).astype(out_ref.dtype)

    return kernel


# --------------------------- wrapper ------------------------------------------
def sequence_layer_pallas(u, params, layer_widths, skip_connection=False,
                          compute_dtype=jnp.float32):
    """u: (B, T, d_in) float32.  Returns (B, T, layer_widths[-1]) float32."""
    B, T, d_in = u.shape
    dh = params["nu_log"].shape[0]
    d_lru = layer_widths[0]
    d_out = layer_widths[-1]
    num_linear = len(layer_widths) - 1
    f32 = jnp.float32
    cdt = compute_dtype

    if skip_connection and d_in != d_out:
        raise ValueError("Skip connection requires d_in == d_out")

    # ---- LRU parameters (matches the PyTorch forward exactly) ----
    # init_states is None in this instantiation -> h starts at zeros.
    lam_abs = jnp.exp(-jnp.exp(params["nu_log"]))
    theta = jnp.exp(params["theta_log"])
    lam_re = (lam_abs * jnp.cos(theta)).reshape(1, 1, dh).astype(f32)
    lam_im = (lam_abs * jnp.sin(theta)).reshape(1, 1, dh).astype(f32)
    # NOTE: reference uses torch.diag(gamma_log) (NOT exp(gamma_log)); keep it.
    bn_re_T = (params["gamma_log"][:, None] * params["B_re"]).T.astype(cdt)   # (d_in, dh)
    bn_im_T = (params["gamma_log"][:, None] * params["B_im"]).T.astype(cdt)
    c_re_T = params["C_re"].T.astype(cdt)                                     # (dh, d_lru)
    c_imn_T = (-params["C_im"]).T.astype(cdt)
    d_T = params["D"].T.astype(cdt)                                           # (d_in, d_lru)

    full2 = lambda a: pl.BlockSpec(a.shape, lambda b, t: (0, 0))
    lin_args, lin_specs = [], []
    weight_shapes = [bn_re_T.shape, bn_im_T.shape, c_re_T.shape,
                     c_imn_T.shape, d_T.shape]
    for i in range(num_linear):
        w_T = params[f"W{i}"].T.astype(cdt)
        bias = params[f"b{i}"].reshape(1, -1).astype(f32)
        lin_args += [w_T, bias]
        lin_specs += [full2(w_T), full2(bias)]
        weight_shapes += [w_T.shape, bias.shape]

    # ---- block sizes from the per-generation VMEM budget ----
    vmem_limit, budget, bb_max = _vmem_config()
    BB, Bp, TB, Tp = _select_blocks(B, T, d_in, dh, d_out, weight_shapes,
                                    budget, bb_max)
    unroll = _select_unroll(BB, TB, dh)

    # ---- pad (only if needed) and go time-major: (Tp, Bp, d_in) ----
    u_p = u
    if Bp != B or Tp != T:
        u_p = jnp.pad(u, ((0, Bp - B), (0, Tp - T), (0, 0)))
    u_tm = jnp.transpose(u_p, (1, 0, 2))      # cheap XLA transpose of narrow u

    # ---- advisory cost estimate ----
    M = Bp * Tp
    flops = (2 * M * d_in * 2 * dh            # B projection
             + 8 * M * dh                     # complex recurrence
             + 2 * M * 2 * dh * d_lru         # C projection
             + 2 * M * d_in * d_lru)          # D projection
    for i in range(num_linear):
        flops += 2 * M * layer_widths[i] * layer_widths[i + 1]
    bytes_accessed = 4 * (M * d_in + M * d_out
                          + sum(k * n for (k, n) in weight_shapes))
    cost = pl.CostEstimate(flops=int(flops), transcendentals=0,
                           bytes_accessed=int(bytes_accessed))

    grid = (Bp // BB, Tp // TB)
    lam_spec = pl.BlockSpec((1, 1, dh), lambda b, t: (0, 0, 0))
    kernel = _make_fused_kernel(num_linear, cdt, unroll)

    y_tm = pl.pallas_call(
        kernel,
        out_shape=jax.ShapeDtypeStruct((Tp, Bp, d_out), f32),
        grid_spec=pltpu.PrefetchScalarGridSpec(
            num_scalar_prefetch=0,
            grid=grid,
            in_specs=[pl.BlockSpec((TB, BB, d_in), lambda b, t: (t, b, 0)),
                      full2(bn_re_T), full2(bn_im_T),
                      lam_spec, lam_spec,
                      full2(c_re_T), full2(c_imn_T), full2(d_T),
                      *lin_specs],
            out_specs=pl.BlockSpec((TB, BB, d_out), lambda b, t: (t, b, 0)),
            scratch_shapes=[pltpu.VMEM((TB, BB, dh), f32),   # p_re
                            pltpu.VMEM((TB, BB, dh), f32),   # p_im
                            pltpu.VMEM((TB, BB, dh), f32),   # h_re
                            pltpu.VMEM((TB, BB, dh), f32),   # h_im
                            pltpu.VMEM((1, BB, dh), f32),    # carried h_re
                            pltpu.VMEM((1, BB, dh), f32)]),  # carried h_im
        compiler_params=pltpu.CompilerParams(
            dimension_semantics=("parallel", "arbitrary"),
            vmem_limit_bytes=vmem_limit),
        cost_estimate=cost,
    )(u_tm, bn_re_T, bn_im_T, lam_re, lam_im, c_re_T, c_imn_T, d_T, *lin_args)

    y = jnp.transpose(y_tm, (1, 0, 2))[:B, :T]
    if skip_connection:
        y = y + u
    return y


# --------------------------- reference & init ---------------------------------
def sequence_layer_ref(u, params, layer_widths):
    """Pure-JAX reference (mirrors the PyTorch forward)."""
    d_hidden = params["nu_log"].shape[0]
    lam = jnp.exp(-jnp.exp(params["nu_log"]) + 1j * jnp.exp(params["theta_log"]))
    B_norm = (params["gamma_log"][:, None].astype(jnp.complex64)
              * (params["B_re"] + 1j * params["B_im"]))
    C = params["C_re"] + 1j * params["C_im"]
    B, T, _ = u.shape
    h = jnp.zeros((B, d_hidden), dtype=jnp.complex64)
    ys = []
    for t in range(T):
        h = h * lam + u[:, t].astype(jnp.complex64) @ B_norm.T
        y = jnp.real(h @ C.T) + u[:, t] @ params["D"].T
        ys.append(y)
    y = jnp.stack(ys, axis=1)
    num_linear = len(layer_widths) - 1
    for i in range(num_linear):
        y = y @ params[f"W{i}"].T + params[f"b{i}"]
        if i != num_linear - 1:
            y = jnp.maximum(y, 0.0)
    return y


def init_params(key, d_in, d_hidden, layer_widths,
                r_min=0.0, r_max=1.0, max_phase=6.28):
    """Deterministic init mirroring LRU._init_params / nn.Linear shapes."""
    ks = jax.random.split(key, 16)
    p = {}
    p["theta_log"] = jax.random.uniform(ks[0], (d_hidden,), minval=0.0, maxval=max_phase)
    u0 = jax.random.uniform(ks[1], (d_hidden,))
    p["nu_log"] = jnp.log(-0.5 * jnp.log(u0 * (r_max ** 2 - r_min ** 2) + r_min ** 2))
    lam_abs = jnp.exp(-jnp.exp(p["nu_log"]))
    p["gamma_log"] = jnp.log(jnp.sqrt(1.0 - lam_abs ** 2))

    def xavier(k, shape):
        std = math.sqrt(2.0 / (shape[0] + shape[1]))
        return std * jax.random.normal(k, shape, dtype=jnp.float32)

    d_lru_out = layer_widths[0]
    p["B_re"] = xavier(ks[2], (d_hidden, d_in))
    p["B_im"] = xavier(ks[3], (d_hidden, d_in))
    p["C_re"] = xavier(ks[4], (d_lru_out, d_hidden))
    p["C_im"] = xavier(ks[5], (d_lru_out, d_hidden))
    p["D"] = xavier(ks[6], (d_lru_out, d_in))

    for i in range(len(layer_widths) - 1):
        fin, fout = layer_widths[i], layer_widths[i + 1]
        bound = 1.0 / math.sqrt(fin)
        p[f"W{i}"] = jax.random.uniform(ks[7 + 2 * i], (fout, fin),
                                        minval=-bound, maxval=bound)
        p[f"b{i}"] = jax.random.uniform(ks[8 + 2 * i], (fout,),
                                        minval=-bound, maxval=bound)
    return p


if __name__ == "__main__":
    # Small shapes consistent with the module's forward: u is (batch, seq, d_in)
    B, T = 2, 8
    d_in, d_hidden = 4, 32
    layer_widths = [32, 16, 8]   # LRU d_out=32 -> Linear 32->16 + ReLU -> Linear 16->8

    key = jax.random.PRNGKey(0)
    kp, ku = jax.random.split(key)
    params = init_params(kp, d_in, d_hidden, layer_widths)
    u = jax.random.normal(ku, (B, T, d_in), dtype=jnp.float32)

    ref = sequence_layer_ref(u, params, layer_widths)

    # f32 MXU operands: tight correctness check.
    fwd_f32 = jax.jit(partial(sequence_layer_pallas, params=params,
                              layer_widths=layer_widths,
                              compute_dtype=jnp.float32))
    out_f32 = jax.block_until_ready(fwd_f32(u))
    assert out_f32.shape == (B, T, layer_widths[-1])
    assert jnp.allclose(out_f32, ref, atol=2e-3, rtol=2e-3), (
        f"f32 max abs err = {float(jnp.max(jnp.abs(out_f32 - ref)))}")

    # bf16 MXU operands (throughput mode); recurrence + accumulation stay f32,
    # so only a loose sanity check vs the f32 reference.
    fwd_bf16 = jax.jit(partial(sequence_layer_pallas, params=params,
                               layer_widths=layer_widths,
                               compute_dtype=jnp.bfloat16))
    out_bf16 = jax.block_until_ready(fwd_bf16(u))
    rel = float(jnp.linalg.norm(out_bf16 - ref) / (jnp.linalg.norm(ref) + 1e-12))
    assert rel < 5e-2, f"bf16 relative error = {rel}"

    print("KERNEL_OK")
</pallas_src>

<mosaic_0001>
module attributes {stable_mosaic.version = 11 : i64} {
  func.func @kernel(%arg0: i32, %arg1: i32, %arg2: memref<8x8x4xf32, #tpu.memory_space<vmem>>, %arg3: memref<4x32xf32, #tpu.memory_space<vmem>>, %arg4: memref<4x32xf32, #tpu.memory_space<vmem>>, %arg5: memref<1x1x32xf32, #tpu.memory_space<vmem>>, %arg6: memref<1x1x32xf32, #tpu.memory_space<vmem>>, %arg7: memref<32x32xf32, #tpu.memory_space<vmem>>, %arg8: memref<32x32xf32, #tpu.memory_space<vmem>>, %arg9: memref<4x32xf32, #tpu.memory_space<vmem>>, %arg10: memref<32x16xf32, #tpu.memory_space<vmem>>, %arg11: memref<1x16xf32, #tpu.memory_space<vmem>>, %arg12: memref<16x8xf32, #tpu.memory_space<vmem>>, %arg13: memref<1x8xf32, #tpu.memory_space<vmem>>, %arg14: memref<8x8x8xf32, #tpu.memory_space<vmem>>, %arg15: memref<8x8x32xf32, #tpu.memory_space<vmem>>, %arg16: memref<8x8x32xf32, #tpu.memory_space<vmem>>, %arg17: memref<8x8x32xf32, #tpu.memory_space<vmem>>, %arg18: memref<8x8x32xf32, #tpu.memory_space<vmem>>, %arg19: memref<1x8x32xf32, #tpu.memory_space<vmem>>, %arg20: memref<1x8x32xf32, #tpu.memory_space<vmem>>) attributes {dimension_semantics = [#tpu.dimension_semantics<parallel>, #tpu.dimension_semantics<arbitrary>], iteration_bounds = array<i64: 1, 1>, scalar_prefetch = 0 : i64, scratch_operands = 6 : i64, tpu.core_type = #tpu.core_type<tc>, window_params = [{transform_indices = @transform_0, window_bounds = array<i64: 8, 8, 4>}, {pipeline_mode = #tpu.pipeline_mode<synchronous>, transform_indices = @transform_1, window_bounds = array<i64: 4, 32>}, {pipeline_mode = #tpu.pipeline_mode<synchronous>, transform_indices = @transform_2, window_bounds = array<i64: 4, 32>}, {pipeline_mode = #tpu.pipeline_mode<synchronous>, transform_indices = @transform_3, window_bounds = array<i64: 1, 1, 32>}, {pipeline_mode = #tpu.pipeline_mode<synchronous>, transform_indices = @transform_4, window_bounds = array<i64: 1, 1, 32>}, {pipeline_mode = #tpu.pipeline_mode<synchronous>, transform_indices = @transform_5, window_bounds = array<i64: 32, 32>}, {pipeline_mode = #tpu.pipeline_mode<synchronous>, transform_indices = @transform_6, window_bounds = array<i64: 32, 32>}, {pipeline_mode = #tpu.pipeline_mode<synchronous>, transform_indices = @transform_7, window_bounds = array<i64: 4, 32>}, {pipeline_mode = #tpu.pipeline_mode<synchronous>, transform_indices = @transform_8, window_bounds = array<i64: 32, 16>}, {pipeline_mode = #tpu.pipeline_mode<synchronous>, transform_indices = @transform_9, window_bounds = array<i64: 1, 16>}, {pipeline_mode = #tpu.pipeline_mode<synchronous>, transform_indices = @transform_10, window_bounds = array<i64: 16, 8>}, {pipeline_mode = #tpu.pipeline_mode<synchronous>, transform_indices = @transform_11, window_bounds = array<i64: 1, 8>}, {transform_indices = @transform_12, window_bounds = array<i64: 8, 8, 8>}]} {
    %c0 = arith.constant 0 : index
    %c0_0 = arith.constant 0 : index
    %c0_1 = arith.constant 0 : index
    %0 = vector.load %arg2[%c0, %c0_0, %c0_1] : memref<8x8x4xf32, #tpu.memory_space<vmem>>, vector<8x8x4xf32>
    %1 = vector.shape_cast %0 : vector<8x8x4xf32> to vector<64x4xf32>
    %c0_2 = arith.constant 0 : index
    %c0_3 = arith.constant 0 : index
    %2 = vector.load %arg3[%c0_2, %c0_3] : memref<4x32xf32, #tpu.memory_space<vmem>>, vector<4x32xf32>
    %cst = arith.constant dense<0.000000e+00> : vector<64x32xf32>
    %3 = tpu.matmul %1, %2, %cst {dimension_numbers = #tpu.dot_dimension_numbers<[1], [0], [0], [1], [0, 0, 1, 1], [], []>} : vector<64x4xf32>, vector<4x32xf32>, vector<64x32xf32> -> vector<64x32xf32>
    %4 = vector.shape_cast %3 : vector<64x32xf32> to vector<8x8x32xf32>
    %c0_4 = arith.constant 0 : index
    %c0_5 = arith.constant 0 : index
    %c0_6 = arith.constant 0 : index
    %5 = vector.load %arg15[%c0_4, %c0_5, %c0_6] : memref<8x8x32xf32, #tpu.memory_space<vmem>>, vector<8x8x32xf32>
    tpu.vector_store %arg15[%c0_4, %c0_5, %c0_6], %4 {strides = array<i32>} : memref<8x8x32xf32, #tpu.memory_space<vmem>>, vector<8x8x32xf32>,
    %c0_7 = arith.constant 0 : index
    %c0_8 = arith.constant 0 : index
    %6 = vector.load %arg4[%c0_7, %c0_8] : memref<4x32xf32, #tpu.memory_space<vmem>>, vector<4x32xf32>
    %cst_9 = arith.constant dense<0.000000e+00> : vector<64x32xf32>
    %7 = tpu.matmul %1, %6, %cst_9 {dimension_numbers = #tpu.dot_dimension_numbers<[1], [0], [0], [1], [0, 0, 1, 1], [], []>} : vector<64x4xf32>, vector<4x32xf32>, vector<64x32xf32> -> vector<64x32xf32>
    %8 = vector.shape_cast %7 : vector<64x32xf32> to vector<8x8x32xf32>
    %c0_10 = arith.constant 0 : index
    %c0_11 = arith.constant 0 : index
    %c0_12 = arith.constant 0 : index
    %9 = vector.load %arg16[%c0_10, %c0_11, %c0_12] : memref<8x8x32xf32, #tpu.memory_space<vmem>>, vector<8x8x32xf32>
    tpu.vector_store %arg16[%c0_10, %c0_11, %c0_12], %8 {strides = array<i32>} : memref<8x8x32xf32, #tpu.memory_space<vmem>>, vector<8x8x32xf32>,
    %c0_i32 = arith.constant 0 : i32
    %10 = arith.cmpi eq, %arg1, %c0_i32 : i32
    %11 = arith.extui %10 : i1 to i32
    %c0_i32_13 = arith.constant 0 : i32
    %12 = arith.cmpi ne, %11, %c0_i32_13 : i32
    scf.if %12 {
      %cst_126 = arith.constant 0.000000e+00 : f32
      %177 = vector.broadcast %cst_126 : f32 to vector<1x8x32xf32>
      %c0_127 = arith.constant 0 : index
      %c0_128 = arith.constant 0 : index
      %c0_129 = arith.constant 0 : index
      %178 = vector.load %arg19[%c0_127, %c0_128, %c0_129] : memref<1x8x32xf32, #tpu.memory_space<vmem>>, vector<1x8x32xf32>
      tpu.vector_store %arg19[%c0_127, %c0_128, %c0_129], %177 {strides = array<i32>} : memref<1x8x32xf32, #tpu.memory_space<vmem>>, vector<1x8x32xf32>,
      %cst_130 = arith.constant 0.000000e+00 : f32
      %179 = vector.broadcast %cst_130 : f32 to vector<1x8x32xf32>
      %c0_131 = arith.constant 0 : index
      %c0_132 = arith.constant 0 : index
      %c0_133 = arith.constant 0 : index
      %180 = vector.load %arg20[%c0_131, %c0_132, %c0_133] : memref<1x8x32xf32, #tpu.memory_space<vmem>>, vector<1x8x32xf32>
      tpu.vector_store %arg20[%c0_131, %c0_132, %c0_133], %179 {strides = array<i32>} : memref<1x8x32xf32, #tpu.memory_space<vmem>>, vector<1x8x32xf32>,
    } else {
    }
    %c0_14 = arith.constant 0 : index
    %c0_15 = arith.constant 0 : index
    %c0_16 = arith.constant 0 : index
    %13 = vector.load %arg5[%c0_14, %c0_15, %c0_16] : memref<1x1x32xf32, #tpu.memory_space<vmem>>, vector<1x1x32xf32>
    %14 = vector.shape_cast %13 : vector<1x1x32xf32> to vector<1x1x32xf32>
    %15 = vector.broadcast %14 : vector<1x1x32xf32> to vector<1x8x32xf32>
    %c0_17 = arith.constant 0 : index
    %c0_18 = arith.constant 0 : index
    %c0_19 = arith.constant 0 : index
    %16 = vector.load %arg6[%c0_17, %c0_18, %c0_19] : memref<1x1x32xf32, #tpu.memory_space<vmem>>, vector<1x1x32xf32>
    %17 = vector.shape_cast %16 : vector<1x1x32xf32> to vector<1x1x32xf32>
    %18 = vector.broadcast %17 : vector<1x1x32xf32> to vector<1x8x32xf32>
    %c0_20 = arith.constant 0 : index
    %c0_21 = arith.constant 0 : index
    %c0_22 = arith.constant 0 : index
    %19 = vector.load %arg19[%c0_20, %c0_21, %c0_22] : memref<1x8x32xf32, #tpu.memory_space<vmem>>, vector<1x8x32xf32>
    %c0_23 = arith.constant 0 : index
    %c0_24 = arith.constant 0 : index
    %c0_25 = arith.constant 0 : index
    %20 = vector.load %arg20[%c0_23, %c0_24, %c0_25] : memref<1x8x32xf32, #tpu.memory_space<vmem>>, vector<1x8x32xf32>
    %c0_i32_26 = arith.constant 0 : i32
    %21 = arith.index_cast %c0_i32_26 : i32 to index
    %c0_27 = arith.constant 0 : index
    %c0_28 = arith.constant 0 : index
    %22 = vector.load %arg15[%21, %c0_27, %c0_28] : memref<8x8x32xf32, #tpu.memory_space<vmem>>, vector<1x8x32xf32>
    %23 = arith.index_cast %c0_i32_26 : i32 to index
    %c0_29 = arith.constant 0 : index
    %c0_30 = arith.constant 0 : index
    %24 = vector.load %arg16[%23, %c0_29, %c0_30] : memref<8x8x32xf32, #tpu.memory_space<vmem>>, vector<1x8x32xf32>
    %25 = arith.mulf %19, %15 : vector<1x8x32xf32>
    %26 = arith.mulf %20, %18 : vector<1x8x32xf32>
    %27 = arith.subf %25, %26 : vector<1x8x32xf32>
    %28 = arith.addf %27, %22 : vector<1x8x32xf32>
    %29 = arith.mulf %19, %18 : vector<1x8x32xf32>
    %30 = arith.mulf %20, %15 : vector<1x8x32xf32>
    %31 = arith.addf %29, %30 : vector<1x8x32xf32>
    %32 = arith.addf %31, %24 : vector<1x8x32xf32>
    %33 = arith.index_cast %c0_i32_26 : i32 to index
    %c0_31 = arith.constant 0 : index
    %c0_32 = arith.constant 0 : index
    %34 = vector.load %arg17[%33, %c0_31, %c0_32] : memref<8x8x32xf32, #tpu.memory_space<vmem>>, vector<1x8x32xf32>
    tpu.vector_store %arg17[%33, %c0_31, %c0_32], %28 {strides = array<i32>} : memref<8x8x32xf32, #tpu.memory_space<vmem>>, vector<1x8x32xf32>,
    %35 = arith.index_cast %c0_i32_26 : i32 to index
    %c0_33 = arith.constant 0 : index
    %c0_34 = arith.constant 0 : index
    %36 = vector.load %arg18[%35, %c0_33, %c0_34] : memref<8x8x32xf32, #tpu.memory_space<vmem>>, vector<1x8x32xf32>
    tpu.vector_store %arg18[%35, %c0_33, %c0_34], %32 {strides = array<i32>} : memref<8x8x32xf32, #tpu.memory_space<vmem>>, vector<1x8x32xf32>,
    %c1_i32 = arith.constant 1 : i32
    %37 = arith.index_cast %c1_i32 : i32 to index
    %c0_35 = arith.constant 0 : index
    %c0_36 = arith.constant 0 : index
    %38 = vector.load %arg15[%37, %c0_35, %c0_36] : memref<8x8x32xf32, #tpu.memory_space<vmem>>, vector<1x8x32xf32>
    %39 = arith.index_cast %c1_i32 : i32 to index
    %c0_37 = arith.constant 0 : index
    %c0_38 = arith.constant 0 : index
    %40 = vector.load %arg16[%39, %c0_37, %c0_38] : memref<8x8x32xf32, #tpu.memory_space<vmem>>, vector<1x8x32xf32>
    %41 = arith.mulf %28, %15 : vector<1x8x32xf32>
    %42 = arith.mulf %32, %18 : vector<1x8x32xf32>
    %43 = arith.subf %41, %42 : vector<1x8x32xf32>
    %44 = arith.addf %43, %38 : vector<1x8x32xf32>
    %45 = arith.mulf %28, %18 : vector<1x8x32xf32>
    %46 = arith.mulf %32, %15 : vector<1x8x32xf32>
    %47 = arith.addf %45, %46 : vector<1x8x32xf32>
    %48 = arith.addf %47, %40 : vector<1x8x32xf32>
    %49 = arith.index_cast %c1_i32 : i32 to index
    %c0_39 = arith.constant 0 : index
    %c0_40 = arith.constant 0 : index
    %50 = vector.load %arg17[%49, %c0_39, %c0_40] : memref<8x8x32xf32, #tpu.memory_space<vmem>>, vector<1x8x32xf32>
    tpu.vector_store %arg17[%49, %c0_39, %c0_40], %44 {strides = array<i32>} : memref<8x8x32xf32, #tpu.memory_space<vmem>>, vector<1x8x32xf32>,
    %51 = arith.index_cast %c1_i32 : i32 to index
    %c0_41 = arith.constant 0 : index
    %c0_42 = arith.constant 0 : index
    %52 = vector.load %arg18[%51, %c0_41, %c0_42] : memref<8x8x32xf32, #tpu.memory_space<vmem>>, vector<1x8x32xf32>
    tpu.vector_store %arg18[%51, %c0_41, %c0_42], %48 {strides = array<i32>} : memref<8x8x32xf32, #tpu.memory_space<vmem>>, vector<1x8x32xf32>,
    %c2_i32 = arith.constant 2 : i32
    %53 = arith.index_cast %c2_i32 : i32 to index
    %c0_43 = arith.constant 0 : index
    %c0_44 = arith.constant 0 : index
    %54 = vector.load %arg15[%53, %c0_43, %c0_44] : memref<8x8x32xf32, #tpu.memory_space<vmem>>, vector<1x8x32xf32>
    %55 = arith.index_cast %c2_i32 : i32 to index
    %c0_45 = arith.constant 0 : index
    %c0_46 = arith.constant 0 : index
    %56 = vector.load %arg16[%55, %c0_45, %c0_46] : memref<8x8x32xf32, #tpu.memory_space<vmem>>, vector<1x8x32xf32>
    %57 = arith.mulf %44, %15 : vector<1x8x32xf32>
    %58 = arith.mulf %48, %18 : vector<1x8x32xf32>
    %59 = arith.subf %57, %58 : vector<1x8x32xf32>
    %60 = arith.addf %59, %54 : vector<1x8x32xf32>
    %61 = arith.mulf %44, %18 : vector<1x8x32xf32>
    %62 = arith.mulf %48, %15 : vector<1x8x32xf32>
    %63 = arith.addf %61, %62 : vector<1x8x32xf32>
    %64 = arith.addf %63, %56 : vector<1x8x32xf32>
    %65 = arith.index_cast %c2_i32 : i32 to index
    %c0_47 = arith.constant 0 : index
    %c0_48 = arith.constant 0 : index
    %66 = vector.load %arg17[%65, %c0_47, %c0_48] : memref<8x8x32xf32, #tpu.memory_space<vmem>>, vector<1x8x32xf32>
    tpu.vector_store %arg17[%65, %c0_47, %c0_48], %60 {strides = array<i32>} : memref<8x8x32xf32, #tpu.memory_space<vmem>>, vector<1x8x32xf32>,
    %67 = arith.index_cast %c2_i32 : i32 to index
    %c0_49 = arith.constant 0 : index
    %c0_50 = arith.constant 0 : index
    %68 = vector.load %arg18[%67, %c0_49, %c0_50] : memref<8x8x32xf32, #tpu.memory_space<vmem>>, vector<1x8x32xf32>
    tpu.vector_store %arg18[%67, %c0_49, %c0_50], %64 {strides = array<i32>} : memref<8x8x32xf32, #tpu.memory_space<vmem>>, vector<1x8x32xf32>,
    %c3_i32 = arith.constant 3 : i32
    %69 = arith.index_cast %c3_i32 : i32 to index
    %c0_51 = arith.constant 0 : index
    %c0_52 = arith.constant 0 : index
    %70 = vector.load %arg15[%69, %c0_51, %c0_52] : memref<8x8x32xf32, #tpu.memory_space<vmem>>, vector<1x8x32xf32>
    %71 = arith.index_cast %c3_i32 : i32 to index
    %c0_53 = arith.constant 0 : index
    %c0_54 = arith.constant 0 : index
    %72 = vector.load %arg16[%71, %c0_53, %c0_54] : memref<8x8x32xf32, #tpu.memory_space<vmem>>, vector<1x8x32xf32>
    %73 = arith.mulf %60, %15 : vector<1x8x32xf32>
    %74 = arith.mulf %64, %18 : vector<1x8x32xf32>
    %75 = arith.subf %73, %74 : vector<1x8x32xf32>
    %76 = arith.addf %75, %70 : vector<1x8x32xf32>
    %77 = arith.mulf %60, %18 : vector<1x8x32xf32>
    %78 = arith.mulf %64, %15 : vector<1x8x32xf32>
    %79 = arith.addf %77, %78 : vector<1x8x32xf32>
    %80 = arith.addf %79, %72 : vector<1x8x32xf32>
    %81 = arith.index_cast %c3_i32 : i32 to index
    %c0_55 = arith.constant 0 : index
    %c0_56 = arith.constant 0 : index
    %82 = vector.load %arg17[%81, %c0_55, %c0_56] : memref<8x8x32xf32, #tpu.memory_space<vmem>>, vector<1x8x32xf32>
    tpu.vector_store %arg17[%81, %c0_55, %c0_56], %76 {strides = array<i32>} : memref<8x8x32xf32, #tpu.memory_space<vmem>>, vector<1x8x32xf32>,
    %83 = arith.index_cast %c3_i32 : i32 to index
    %c0_57 = arith.constant 0 : index
    %c0_58 = arith.constant 0 : index
    %84 = vector.load %arg18[%83, %c0_57, %c0_58] : memref<8x8x32xf32, #tpu.memory_space<vmem>>, vector<1x8x32xf32>
    tpu.vector_store %arg18[%83, %c0_57, %c0_58], %80 {strides = array<i32>} : memref<8x8x32xf32, #tpu.memory_space<vmem>>, vector<1x8x32xf32>,
    %c4_i32 = arith.constant 4 : i32
    %85 = arith.index_cast %c4_i32 : i32 to index
    %c0_59 = arith.constant 0 : index
    %c0_60 = arith.constant 0 : index
    %86 = vector.load %arg15[%85, %c0_59, %c0_60] : memref<8x8x32xf32, #tpu.memory_space<vmem>>, vector<1x8x32xf32>
    %87 = arith.index_cast %c4_i32 : i32 to index
    %c0_61 = arith.constant 0 : index
    %c0_62 = arith.constant 0 : index
    %88 = vector.load %arg16[%87, %c0_61, %c0_62] : memref<8x8x32xf32, #tpu.memory_space<vmem>>, vector<1x8x32xf32>
    %89 = arith.mulf %76, %15 : vector<1x8x32xf32>
    %90 = arith.mulf %80, %18 : vector<1x8x32xf32>
    %91 = arith.subf %89, %90 : vector<1x8x32xf32>
    %92 = arith.addf %91, %86 : vector<1x8x32xf32>
    %93 = arith.mulf %76, %18 : vector<1x8x32xf32>
    %94 = arith.mulf %80, %15 : vector<1x8x32xf32>
    %95 = arith.addf %93, %94 : vector<1x8x32xf32>
    %96 = arith.addf %95, %88 : vector<1x8x32xf32>
    %97 = arith.index_cast %c4_i32 : i32 to index
    %c0_63 = arith.constant 0 : index
    %c0_64 = arith.constant 0 : index
    %98 = vector.load %arg17[%97, %c0_63, %c0_64] : memref<8x8x32xf32, #tpu.memory_space<vmem>>, vector<1x8x32xf32>
    tpu.vector_store %arg17[%97, %c0_63, %c0_64], %92 {strides = array<i32>} : memref<8x8x32xf32, #tpu.memory_space<vmem>>, vector<1x8x32xf32>,
    %99 = arith.index_cast %c4_i32 : i32 to index
    %c0_65 = arith.constant 0 : index
    %c0_66 = arith.constant 0 : index
    %100 = vector.load %arg18[%99, %c0_65, %c0_66] : memref<8x8x32xf32, #tpu.memory_space<vmem>>, vector<1x8x32xf32>
    tpu.vector_store %arg18[%99, %c0_65, %c0_66], %96 {strides = array<i32>} : memref<8x8x32xf32, #tpu.memory_space<vmem>>, vector<1x8x32xf32>,
    %c5_i32 = arith.constant 5 : i32
    %101 = arith.index_cast %c5_i32 : i32 to index
    %c0_67 = arith.constant 0 : index
    %c0_68 = arith.constant 0 : index
    %102 = vector.load %arg15[%101, %c0_67, %c0_68] : memref<8x8x32xf32, #tpu.memory_space<vmem>>, vector<1x8x32xf32>
    %103 = arith.index_cast %c5_i32 : i32 to index
    %c0_69 = arith.constant 0 : index
    %c0_70 = arith.constant 0 : index
    %104 = vector.load %arg16[%103, %c0_69, %c0_70] : memref<8x8x32xf32, #tpu.memory_space<vmem>>, vector<1x8x32xf32>
    %105 = arith.mulf %92, %15 : vector<1x8x32xf32>
    %106 = arith.mulf %96, %18 : vector<1x8x32xf32>
    %107 = arith.subf %105, %106 : vector<1x8x32xf32>
    %108 = arith.addf %107, %102 : vector<1x8x32xf32>
    %109 = arith.mulf %92, %18 : vector<1x8x32xf32>
    %110 = arith.mulf %96, %15 : vector<1x8x32xf32>
    %111 = arith.addf %109, %110 : vector<1x8x32xf32>
    %112 = arith.addf %111, %104 : vector<1x8x32xf32>
    %113 = arith.index_cast %c5_i32 : i32 to index
    %c0_71 = arith.constant 0 : index
    %c0_72 = arith.constant 0 : index
    %114 = vector.load %arg17[%113, %c0_71, %c0_72] : memref<8x8x32xf32, #tpu.memory_space<vmem>>, vector<1x8x32xf32>
    tpu.vector_store %arg17[%113, %c0_71, %c0_72], %108 {strides = array<i32>} : memref<8x8x32xf32, #tpu.memory_space<vmem>>, vector<1x8x32xf32>,
    %115 = arith.index_cast %c5_i32 : i32 to index
    %c0_73 = arith.constant 0 : index
    %c0_74 = arith.constant 0 : index
    %116 = vector.load %arg18[%115, %c0_73, %c0_74] : memref<8x8x32xf32, #tpu.memory_space<vmem>>, vector<1x8x32xf32>
    tpu.vector_store %arg18[%115, %c0_73, %c0_74], %112 {strides = array<i32>} : memref<8x8x32xf32, #tpu.memory_space<vmem>>, vector<1x8x32xf32>,
    %c6_i32 = arith.constant 6 : i32
    %117 = arith.index_cast %c6_i32 : i32 to index
    %c0_75 = arith.constant 0 : index
    %c0_76 = arith.constant 0 : index
    %118 = vector.load %arg15[%117, %c0_75, %c0_76] : memref<8x8x32xf32, #tpu.memory_space<vmem>>, vector<1x8x32xf32>
    %119 = arith.index_cast %c6_i32 : i32 to index
    %c0_77 = arith.constant 0 : index
    %c0_78 = arith.constant 0 : index
    %120 = vector.load %arg16[%119, %c0_77, %c0_78] : memref<8x8x32xf32, #tpu.memory_space<vmem>>, vector<1x8x32xf32>
    %121 = arith.mulf %108, %15 : vector<1x8x32xf32>
    %122 = arith.mulf %112, %18 : vector<1x8x32xf32>
    %123 = arith.subf %121, %122 : vector<1x8x32xf32>
    %124 = arith.addf %123, %118 : vector<1x8x32xf32>
    %125 = arith.mulf %108, %18 : vector<1x8x32xf32>
    %126 = arith.mulf %112, %15 : vector<1x8x32xf32>
    %127 = arith.addf %125, %126 : vector<1x8x32xf32>
    %128 = arith.addf %127, %120 : vector<1x8x32xf32>
    %129 = arith.index_cast %c6_i32 : i32 to index
    %c0_79 = arith.constant 0 : index
    %c0_80 = arith.constant 0 : index
    %130 = vector.load %arg17[%129, %c0_79, %c0_80] : memref<8x8x32xf32, #tpu.memory_space<vmem>>, vector<1x8x32xf32>
    tpu.vector_store %arg17[%129, %c0_79, %c0_80], %124 {strides = array<i32>} : memref<8x8x32xf32, #tpu.memory_space<vmem>>, vector<1x8x32xf32>,
    %131 = arith.index_cast %c6_i32 : i32 to index
    %c0_81 = arith.constant 0 : index
    %c0_82 = arith.constant 0 : index
    %132 = vector.load %arg18[%131, %c0_81, %c0_82] : memref<8x8x32xf32, #tpu.memory_space<vmem>>, vector<1x8x32xf32>
    tpu.vector_store %arg18[%131, %c0_81, %c0_82], %128 {strides = array<i32>} : memref<8x8x32xf32, #tpu.memory_space<vmem>>, vector<1x8x32xf32>,
    %c7_i32 = arith.constant 7 : i32
    %133 = arith.index_cast %c7_i32 : i32 to index
    %c0_83 = arith.constant 0 : index
    %c0_84 = arith.constant 0 : index
    %134 = vector.load %arg15[%133, %c0_83, %c0_84] : memref<8x8x32xf32, #tpu.memory_space<vmem>>, vector<1x8x32xf32>
    %135 = arith.index_cast %c7_i32 : i32 to index
    %c0_85 = arith.constant 0 : index
    %c0_86 = arith.constant 0 : index
    %136 = vector.load %arg16[%135, %c0_85, %c0_86] : memref<8x8x32xf32, #tpu.memory_space<vmem>>, vector<1x8x32xf32>
    %137 = arith.mulf %124, %15 : vector<1x8x32xf32>
    %138 = arith.mulf %128, %18 : vector<1x8x32xf32>
    %139 = arith.subf %137, %138 : vector<1x8x32xf32>
    %140 = arith.addf %139, %134 : vector<1x8x32xf32>
    %141 = arith.mulf %124, %18 : vector<1x8x32xf32>
    %142 = arith.mulf %128, %15 : vector<1x8x32xf32>
    %143 = arith.addf %141, %142 : vector<1x8x32xf32>
    %144 = arith.addf %143, %136 : vector<1x8x32xf32>
    %145 = arith.index_cast %c7_i32 : i32 to index
    %c0_87 = arith.constant 0 : index
    %c0_88 = arith.constant 0 : index
    %146 = vector.load %arg17[%145, %c0_87, %c0_88] : memref<8x8x32xf32, #tpu.memory_space<vmem>>, vector<1x8x32xf32>
    tpu.vector_store %arg17[%145, %c0_87, %c0_88], %140 {strides = array<i32>} : memref<8x8x32xf32, #tpu.memory_space<vmem>>, vector<1x8x32xf32>,
    %147 = arith.index_cast %c7_i32 : i32 to index
    %c0_89 = arith.constant 0 : index
    %c0_90 = arith.constant 0 : index
    %148 = vector.load %arg18[%147, %c0_89, %c0_90] : memref<8x8x32xf32, #tpu.memory_space<vmem>>, vector<1x8x32xf32>
    tpu.vector_store %arg18[%147, %c0_89, %c0_90], %144 {strides = array<i32>} : memref<8x8x32xf32, #tpu.memory_space<vmem>>, vector<1x8x32xf32>,
    %c8_i32 = arith.constant 8 : i32
    %c0_91 = arith.constant 0 : index
    %c0_92 = arith.constant 0 : index
    %c0_93 = arith.constant 0 : index
    %149 = vector.load %arg19[%c0_91, %c0_92, %c0_93] : memref<1x8x32xf32, #tpu.memory_space<vmem>>, vector<1x8x32xf32>
    tpu.vector_store %arg19[%c0_91, %c0_92, %c0_93], %140 {strides = array<i32>} : memref<1x8x32xf32, #tpu.memory_space<vmem>>, vector<1x8x32xf32>,
    %c0_94 = arith.constant 0 : index
    %c0_95 = arith.constant 0 : index
    %c0_96 = arith.constant 0 : index
    %150 = vector.load %arg20[%c0_94, %c0_95, %c0_96] : memref<1x8x32xf32, #tpu.memory_space<vmem>>, vector<1x8x32xf32>
    tpu.vector_store %arg20[%c0_94, %c0_95, %c0_96], %144 {strides = array<i32>} : memref<1x8x32xf32, #tpu.memory_space<vmem>>, vector<1x8x32xf32>,
    %c0_97 = arith.constant 0 : index
    %c0_98 = arith.constant 0 : index
    %c0_99 = arith.constant 0 : index
    %151 = vector.load %arg17[%c0_97, %c0_98, %c0_99] : memref<8x8x32xf32, #tpu.memory_space<vmem>>, vector<8x8x32xf32>
    %152 = vector.shape_cast %151 : vector<8x8x32xf32> to vector<64x32xf32>
    %c0_100 = arith.constant 0 : index
    %c0_101 = arith.constant 0 : index
    %c0_102 = arith.constant 0 : index
    %153 = vector.load %arg18[%c0_100, %c0_101, %c0_102] : memref<8x8x32xf32, #tpu.memory_space<vmem>>, vector<8x8x32xf32>
    %154 = vector.shape_cast %153 : vector<8x8x32xf32> to vector<64x32xf32>
    %c0_103 = arith.constant 0 : index
    %c0_104 = arith.constant 0 : index
    %155 = vector.load %arg7[%c0_103, %c0_104] : memref<32x32xf32, #tpu.memory_space<vmem>>, vector<32x32xf32>
    %cst_105 = arith.constant dense<0.000000e+00> : vector<64x32xf32>
    %156 = tpu.matmul %152, %155, %cst_105 {dimension_numbers = #tpu.dot_dimension_numbers<[1], [0], [0], [1], [0, 0, 1, 1], [], []>} : vector<64x32xf32>, vector<32x32xf32>, vector<64x32xf32> -> vector<64x32xf32>
    %c0_106 = arith.constant 0 : index
    %c0_107 = arith.constant 0 : index
    %157 = vector.load %arg8[%c0_106, %c0_107] : memref<32x32xf32, #tpu.memory_space<vmem>>, vector<32x32xf32>
    %cst_108 = arith.constant dense<0.000000e+00> : vector<64x32xf32>
    %158 = tpu.matmul %154, %157, %cst_108 {dimension_numbers = #tpu.dot_dimension_numbers<[1], [0], [0], [1], [0, 0, 1, 1], [], []>} : vector<64x32xf32>, vector<32x32xf32>, vector<64x32xf32> -> vector<64x32xf32>
    %159 = arith.addf %156, %158 : vector<64x32xf32>
    %c0_109 = arith.constant 0 : index
    %c0_110 = arith.constant 0 : index
    %160 = vector.load %arg9[%c0_109, %c0_110] : memref<4x32xf32, #tpu.memory_space<vmem>>, vector<4x32xf32>
    %cst_111 = arith.constant dense<0.000000e+00> : vector<64x32xf32>
    %161 = tpu.matmul %1, %160, %cst_111 {dimension_numbers = #tpu.dot_dimension_numbers<[1], [0], [0], [1], [0, 0, 1, 1], [], []>} : vector<64x4xf32>, vector<4x32xf32>, vector<64x32xf32> -> vector<64x32xf32>
    %162 = arith.addf %159, %161 : vector<64x32xf32>
    %c0_112 = arith.constant 0 : index
    %c0_113 = arith.constant 0 : index
    %163 = vector.load %arg10[%c0_112, %c0_113] : memref<32x16xf32, #tpu.memory_space<vmem>>, vector<32x16xf32>
    %c0_114 = arith.constant 0 : index
    %c0_115 = arith.constant 0 : index
    %164 = vector.load %arg11[%c0_114, %c0_115] : memref<1x16xf32, #tpu.memory_space<vmem>>, vector<1x16xf32>
    %cst_116 = arith.constant dense<0.000000e+00> : vector<64x16xf32>
    %165 = tpu.matmul %162, %163, %cst_116 {dimension_numbers = #tpu.dot_dimension_numbers<[1], [0], [0], [1], [0, 0, 1, 1], [], []>} : vector<64x32xf32>, vector<32x16xf32>, vector<64x16xf32> -> vector<64x16xf32>
    %166 = vector.broadcast %164 : vector<1x16xf32> to vector<64x16xf32>
    %167 = arith.addf %165, %166 : vector<64x16xf32>
    %cst_117 = arith.constant 0.000000e+00 : f32
    %168 = vector.broadcast %cst_117 : f32 to vector<64x16xf32>
    %169 = arith.maximumf %167, %168 : vector<64x16xf32>
    %c0_118 = arith.constant 0 : index
    %c0_119 = arith.constant 0 : index
    %170 = vector.load %arg12[%c0_118, %c0_119] : memref<16x8xf32, #tpu.memory_space<vmem>>, vector<16x8xf32>
    %c0_120 = arith.constant 0 : index
    %c0_121 = arith.constant 0 : index
    %171 = vector.load %arg13[%c0_120, %c0_121] : memref<1x8xf32, #tpu.memory_space<vmem>>, vector<1x8xf32>
    %cst_122 = arith.constant dense<0.000000e+00> : vector<64x8xf32>
    %172 = tpu.matmul %169, %170, %cst_122 {dimension_numbers = #tpu.dot_dimension_numbers<[1], [0], [0], [1], [0, 0, 1, 1], [], []>} : vector<64x16xf32>, vector<16x8xf32>, vector<64x8xf32> -> vector<64x8xf32>
    %173 = vector.broadcast %171 : vector<1x8xf32> to vector<64x8xf32>
    %174 = arith.addf %172, %173 : vector<64x8xf32>
    %175 = vector.shape_cast %174 : vector<64x8xf32> to vector<8x8x8xf32>
    %c0_123 = arith.constant 0 : index
    %c0_124 = arith.constant 0 : index
    %c0_125 = arith.constant 0 : index
    %176 = vector.load %arg14[%c0_123, %c0_124, %c0_125] : memref<8x8x8xf32, #tpu.memory_space<vmem>>, vector<8x8x8xf32>
    tpu.vector_store %arg14[%c0_123, %c0_124, %c0_125], %175 {strides = array<i32>} : memref<8x8x8xf32, #tpu.memory_space<vmem>>, vector<8x8x8xf32>,
    return
  }
  func.func @transform_0(%arg0: i32, %arg1: i32) -> (i32, i32, i32) {
    %c0_i32 = arith.constant 0 : i32
    %c0_i32_0 = arith.constant 0 : i32
    return %arg1, %arg0, %c0_i32 : i32, i32, i32
  }
  func.func @transform_1(%arg0: i32, %arg1: i32) -> (i32, i32) {
    %c0_i32 = arith.constant 0 : i32
    %c0_i32_0 = arith.constant 0 : i32
    %c0_i32_1 = arith.constant 0 : i32
    return %c0_i32, %c0_i32_0 : i32, i32
  }
  func.func @transform_2(%arg0: i32, %arg1: i32) -> (i32, i32) {
    %c0_i32 = arith.constant 0 : i32
    %c0_i32_0 = arith.constant 0 : i32
    %c0_i32_1 = arith.constant 0 : i32
    return %c0_i32, %c0_i32_0 : i32, i32
  }
  func.func @transform_3(%arg0: i32, %arg1: i32) -> (i32, i32, i32) {
    %c0_i32 = arith.constant 0 : i32
    %c0_i32_0 = arith.constant 0 : i32
    %c0_i32_1 = arith.constant 0 : i32
    %c0_i32_2 = arith.constant 0 : i32
    return %c0_i32, %c0_i32_0, %c0_i32_1 : i32, i32, i32
  }
  func.func @transform_4(%arg0: i32, %arg1: i32) -> (i32, i32, i32) {
    %c0_i32 = arith.constant 0 : i32
    %c0_i32_0 = arith.constant 0 : i32
    %c0_i32_1 = arith.constant 0 : i32
    %c0_i32_2 = arith.constant 0 : i32
    return %c0_i32, %c0_i32_0, %c0_i32_1 : i32, i32, i32
  }
  func.func @transform_5(%arg0: i32, %arg1: i32) -> (i32, i32) {
    %c0_i32 = arith.constant 0 : i32
    %c0_i32_0 = arith.constant 0 : i32
    %c0_i32_1 = arith.constant 0 : i32
    return %c0_i32, %c0_i32_0 : i32, i32
  }
  func.func @transform_6(%arg0: i32, %arg1: i32) -> (i32, i32) {
    %c0_i32 = arith.constant 0 : i32
    %c0_i32_0 = arith.constant 0 : i32
    %c0_i32_1 = arith.constant 0 : i32
    return %c0_i32, %c0_i32_0 : i32, i32
  }
  func.func @transform_7(%arg0: i32, %arg1: i32) -> (i32, i32) {
    %c0_i32 = arith.constant 0 : i32
    %c0_i32_0 = arith.constant 0 : i32
    %c0_i32_1 = arith.constant 0 : i32
    return %c0_i32, %c0_i32_0 : i32, i32
  }
  func.func @transform_8(%arg0: i32, %arg1: i32) -> (i32, i32) {
    %c0_i32 = arith.constant 0 : i32
    %c0_i32_0 = arith.constant 0 : i32
    %c0_i32_1 = arith.constant 0 : i32
    return %c0_i32, %c0_i32_0 : i32, i32
  }
  func.func @transform_9(%arg0: i32, %arg1: i32) -> (i32, i32) {
    %c0_i32 = arith.constant 0 : i32
    %c0_i32_0 = arith.constant 0 : i32
    %c0_i32_1 = arith.constant 0 : i32
    return %c0_i32, %c0_i32_0 : i32, i32
  }
  func.func @transform_10(%arg0: i32, %arg1: i32) -> (i32, i32) {
    %c0_i32 = arith.constant 0 : i32
    %c0_i32_0 = arith.constant 0 : i32
    %c0_i32_1 = arith.constant 0 : i32
    return %c0_i32, %c0_i32_0 : i32, i32
  }
  func.func @transform_11(%arg0: i32, %arg1: i32) -> (i32, i32) {
    %c0_i32 = arith.constant 0 : i32
    %c0_i32_0 = arith.constant 0 : i32
    %c0_i32_1 = arith.constant 0 : i32
    return %c0_i32, %c0_i32_0 : i32, i32
  }
  func.func @transform_12(%arg0: i32, %arg1: i32) -> (i32, i32, i32) {
    %c0_i32 = arith.constant 0 : i32
    %c0_i32_0 = arith.constant 0 : i32
    return %arg1, %arg0, %c0_i32 : i32, i32, i32
  }
}

</mosaic_0001>

<bundles_post_ra>
// kernel: sequence_layer_pallas.1
= control target key start
LH: loop header
LB: loop body
LE: loop exit
PB: predicated region body
PF: predicated region fallthrough
CT: control target
= control target key end

     0   :  { %17 = vsyncpa [#allocation9], 0  ;;  %s1926_s0 = inlined_call_operand.vmem [shape: f32[8,8,4], index: 0, kind: input, shape index: {}]   ;;  %s1927_s1 = inlined_call_operand.vmem [shape: f32[4,32], index: 1, kind: input, shape index: {}]   ;;  %s1928_s2 = inlined_call_operand.vmem [shape: f32[4,32], index: 2, kind: input, shape index: {}]   ;;  %s1929_s3 = inlined_call_operand.vmem [shape: f32[1,1,32], index: 3, kind: input, shape index: {}]   ;;  %s1930_s4 = inlined_call_operand.vmem [shape: f32[1,1,32], index: 4, kind: input, shape index: {}]   ;;  %s1931_s5 = inlined_call_operand.vmem [shape: f32[32,32], index: 5, kind: input, shape index: {}]   ;;  %s1932_s6 = inlined_call_operand.vmem [shape: f32[32,32], index: 6, kind: input, shape index: {}]   ;;  %s1933_s7 = inlined_call_operand.vmem [shape: f32[4,32], index: 7, kind: input, shape index: {}]   ;;  %s1934_s8 = inlined_call_operand.vmem [shape: f32[32,16], index: 8, kind: input, shape index: {}]   ;;  %s1935_s9 = inlined_call_operand.vmem [shape: f32[1,16], index: 9, kind: input, shape index: {}]   ;;  %s1936_s10 = inlined_call_operand.hbm [shape: f32[16,8], index: 10, kind: input, shape index: {}]   ;;  %s1937_s11 = inlined_call_operand.hbm [shape: f32[1,8], index: 11, kind: input, shape index: {}]   ;;  %s1938_s12 = inlined_call_operand.vmem [shape: f32[8,8,8], index: 12, kind: output, shape index: {}]  }
   0x1   :  { %18 = vsyncpa [#allocation11], 0  ;;  %s1538_s21 = smov [#allocation8]   ;;  %s1490_s25 = scalar_lea.hbm %s1936_s10, 256 }
   0x2   :  { %s44_s22 = sshll.u32 %s1538_s21, 4  ;;  %p1491_p0 = scmp.ne.s32.totalorder %s1936_s10, %s1490_s25  ;;  %s45_s22 = int_to_ptr.vmem [resolvable:$true] %s44_s22 }
   0x3   :  { %p1494_p1 = scmp.lt.u32.totalorder %s1490_s25, %s1936_s10 }
   0x5   :  { %p1496_p2 = pnand %p1494_p1, %p1491_p0 }
   0x7   :  { %1499 = shalt.err (!%p1496_p2)
}
   0x8   :  { %s1500_s30 = scalar_lea.vmem %s45_s22, 256  ;;  %p1505_p4 = scmp.lt.s32.totalorder %s45_s22, %s45_s22 }
   0x9   :  { %p1501_p3 = scmp.ne.s32.totalorder %s45_s22, %s1500_s30  ;;  %p1506_p5 = scmp.lt.s32.totalorder %s1500_s30, %s1500_s30 }
   0xb   :  { %p1507_p6 = por %p1506_p5, %p1505_p4 }
   0xd   :  { %p1508_p7 = pnand %p1507_p6, %p1501_p3 }
   0xf   :  { %1511 = shalt.err (!%p1508_p7)
}
  0x10   :  { %s1539_s13 = smov 128   ;;  %s1540_s14 = smov 8  }
  0x11   :  { %50 = dma.hbm_to_vmem [thread:$0]  %s1936_s10, 256, %s45_s22, [#allocation9], %s1539_s13, %s1539_s13, %s1540_s14  }
  0x12   :  { %s1541_s17 = smov [#allocation10]   ;;  %s1512_s21 = scalar_lea.hbm %s1937_s11, 16 }
  0x13   :  { %s57_s18 = sshll.u32 %s1541_s17, 4  ;;  %p1513_p8 = scmp.ne.s32.totalorder %s1937_s11, %s1512_s21  ;;  %s58_s18 = int_to_ptr.vmem [resolvable:$true] %s57_s18 }
  0x14   :  { %p1516_p9 = scmp.lt.u32.totalorder %s1512_s21, %s1937_s11 }
  0x16   :  { %p1518_p10 = pnand %p1516_p9, %p1513_p8 }
  0x18   :  { %1521 = shalt.err (!%p1518_p10)
}
  0x19   :  { %s1522_s27 = scalar_lea.vmem %s58_s18, 16  ;;  %s1526_s10 = scalar_lea.vmem %s58_s18, 32 }
  0x1a   :  { %p1523_p11 = scmp.ne.s32.totalorder %s58_s18, %s1522_s27  ;;  %p1527_p12 = scmp.lt.s32.totalorder %s58_s18, %s58_s18 }
  0x1b   :  { %p1528_p13 = scmp.lt.s32.totalorder %s1526_s10, %s1522_s27 }
  0x1d   :  { %p1529_p0 = por %p1528_p13, %p1527_p12 }
  0x1f   :  { %p1530_p1 = pnand %p1529_p0, %p1523_p11 }
  0x21   :  { %1533 = shalt.err (!%p1530_p1)
}
  0x22   :  { %60 = dma.hbm_to_vmem [thread:$0]  %s1937_s11, 16, %s58_s18, [#allocation11]  }
  0x23   :  { %1534 = dma.done.wait [#allocation9], 256  }
  0x24   :  { %1535 = vsyncadd [#allocation9], 4294967040 }
  0x25   :  { %1536 = dma.done.wait [#allocation11], 16  }
  0x26   :  { %1537 = vsyncadd [#allocation11], 4294967280  ;;  %vm101_vm0 = vcmask 1043456   ;;  %vm76_vm1 = vcmask 31744   ;;  %v75_v0 = vld [vmem:[%s1927_s1] sm:$0xf] }
  0x27   :  { %v1638_v1 = vld [vmem:[%s1926_s0 + $0x20] sm:$0xff]  ;;  %v1643_v2 = vld [vmem:[%s1926_s0 + $0x28] sm:$0xff]  ;;  %1467 = vmatprep.subr.msk.mxu1 %vm101_vm0, %v75_v0  ;;  %v1654_v4 = vld [vmem:[%s1926_s0 + $0x30] sm:$0xff]  ;;  %1321 = vmatprep.subr.msk.mxu0 %vm101_vm0, %v75_v0  ;;  %vm210_vm2 = vcmask 261120   ;;  %v1542_v10 = vmov 0.0   ;;  %vm1040_vm3 = vcmask 130048  }
  0x28   :  { %1329 = vmatprep.mubr.msk.f32.mxu1 %vm76_vm1, %v1638_v1  ;;  %v219_v3 = vld [vmem:[%s1928_s2] sm:$0xf]  ;;  %1468 = vmatpush3.msk.msra.mxu1 %vm101_vm0, %v75_v0  ;;  %v1669_v6 = vld [vmem:[%s1926_s0 + $0x8] sm:$0xff]  ;;  %v1677_v7 = vld [vmem:[%s1926_s0 + $0x38] sm:$0xff]  ;;  %340 = vst.msk [vmem:[#allocation6] sm:$0xff] %vm210_vm2, %v1542_v10  ;;  %vm1170_vm4 = vcmask 64512  }
  0x29   :  { %v1661_v5 = vld [vmem:[%s1926_s0] sm:$0xff]  ;;  %1330 = vmatmul.mubr.msk.f32.vlgmr.msra.gmra.mrb[0].mxu1 %vm76_vm1, %v1643_v2  ;;  %1335 = vmatprep.subr.msk.mxu1 %vm101_vm0, %v219_v3  ;;  %v1682_v8 = vld [vmem:[%s1926_s0 + $0x10] sm:$0xff]  ;;  %v1696_v9 = vld [vmem:[%s1926_s0 + $0x18] sm:$0xff]  ;;  %341 = vst.msk [vmem:[#allocation7] sm:$0xff] %vm210_vm2, %v1542_v10 }
  0x2a   :  { %1336 = vmatpush3.msk.msra.mxu1 %vm101_vm0, %v219_v3  ;;  %1332 = vmatprep.mubr.msk.f32.mxu1 %vm76_vm1, %v1654_v4  ;;  %v504_v11 = vld [vmem:[%s1932_s6] sm:$0xff]  ;;  %v505_v12 = vld [vmem:[%s1932_s6 + $0x8] sm:$0xff]  ;;  %v506_v14 = vld [vmem:[%s1932_s6 + $0x10] sm:$0xff] }
  0x2b   :  { %1322 = vmatpush3.msk.msra.mxu0 %vm101_vm0, %v75_v0  ;;  %1323 = vmatprep.mubr.msk.f32.mxu0 %vm76_vm1, %v1661_v5  ;;  %v1439_v13 = vpack.c.bf16 %v505_v12, %v504_v11  ;;  %v507_v15 = vld [vmem:[%s1932_s6 + $0x18] sm:$0xff]  ;;  %v500_v17 = vld [vmem:[%s1931_s5] sm:$0xff]  ;;  %v501_v18 = vld [vmem:[%s1931_s5 + $0x8] sm:$0xff] }
  0x2c   :  { %1324 = vmatmul.mubr.msk.f32.vlgmr.msra.gmra.mrb[0].mxu0 %vm76_vm1, %v1669_v6  ;;  %v1443_v16 = vpack.c.bf16 %v507_v15, %v506_v14  ;;  %v1736_v19 = vpack.c.bf16 %v501_v18, %v500_v17  ;;  %v883_v20 = vld [vmem:[%s1934_s8] sm:$0xff]  ;;  %v884_v21 = vld [vmem:[%s1934_s8 + $0x8] sm:$0xff]  ;;  %v885_v22 = vld [vmem:[%s1934_s8 + $0x10] sm:$0xff] }
  0x2d   :  { %1333 = vmatmul.mubr.msk.f32.gmra.mrb[2].mxu1 %vm76_vm1, %v1677_v7  ;;  %1326 = vmatprep.mubr.msk.f32.mxu0 %vm76_vm1, %v1682_v8  ;;  %v1455_v23 = vpack.c.bf16 %v884_v21, %v883_v20  ;;  %v886_v24 = vld [vmem:[%s1934_s8 + $0x18] sm:$0xff]  ;;  %v1755_v28 = vld [vmem:[%s1929_s3] ss:$0 sm:$0xff]  ;;  %v502_v20 = vld [vmem:[%s1931_s5 + $0x10] sm:$0xff] }
  0x2e   :  { %1337 = vmatprep.mubr.msk.f32.mxu1 %vm76_vm1, %v1661_v5  ;;  %1440 = vmatprep.subr.bf16.mxu0 %v1439_v13  ;;  %v1459_v25 = vpack.c.bf16 %v886_v24, %v885_v22  ;;  %v1761_v29 = vld [vmem:[%s1930_s4] ss:$0 sm:$0xff]  ;;  %v503_v21 = vld [vmem:[%s1931_s5 + $0x18] sm:$0xff] }
  0x2f   :  { %1442 = vmatpush3.bf16.msra.mxu0 %v1439_v13  ;;  %1456 = vmatprep.subr.bf16.mxu1 %v1455_v23  ;;  %v356_v30 = vld [vmem:[#allocation6] sm:$0xff]  ;;  %v1451_v24 = vpack.c.bf16 %v503_v21, %v502_v20 }
  0x30   :  { %1327 = vmatmul.mubr.msk.f32.gmra.mrb[2].mxu0 %vm76_vm1, %v1696_v9  ;;  %1444 = vmatprep.subr.bf16.mxu0 %v1443_v16  ;;  %v357_v31 = vld [vmem:[#allocation7] sm:$0xff]  ;;  %v360_v36 = vmul.f32 %v1755_v28, %v356_v30  ;;  %v364_v43 = vmul.f32 %v1761_v29, %v356_v30 }
  0x31   :  { %1338 = vmatmul.mubr.msk.f32.vlgmr.msra.gmra.mrb[4].mxu1 %vm76_vm1, %v1669_v6  ;;  %v361_v37 = vmul.f32 %v1761_v29, %v357_v31  ;;  %v365_v44 = vmul.f32 %v1755_v28, %v357_v31 }
  0x32   :  { %1340 = vmatprep.mubr.msk.f32.mxu1 %vm76_vm1, %v1682_v8  ;;  %1458 = vmatpush3.bf16.msra.mxu1 %v1455_v23 }
  0x33   :  { %1446 = vmatpush3.bf16.msra.mxu0 %v1443_v16  ;;  %1460 = vmatprep.subr.bf16.mxu1 %v1459_v25  ;;  %v362_v41 = vsub.f32 %v360_v36, %v361_v37  ;;  %v366_v49 = vadd.f32 %v365_v44, %v364_v43 }
  0x34   :  { %1448 = vmatprep.subr.bf16.mxu0 %v1736_v19 }
  0x35   :  { %1341 = vmatmul.mubr.msk.f32.gmra.mrb[6].mxu1 %vm76_vm1, %v1696_v9 }
  0x36   :  { %1343 = vmatprep.mubr.msk.f32.mxu1 %vm76_vm1, %v1638_v1  ;;  %1462 = vmatpush3.bf16.msra.mxu1 %v1459_v25 }
  0x39   :  { %1344 = vmatmul.mubr.msk.f32.gmra.mrb[8].mxu1 %vm76_vm1, %v1643_v2 }
  0x3a   :  { %1346 = vmatprep.mubr.msk.f32.mxu1 %vm76_vm1, %v1654_v4 }
  0x3d   :  { %1347 = vmatmul.mubr.msk.f32.gmra.mrb[10].mxu1 %vm76_vm1, %v1677_v7 }
  0xfc   :  { %v1331_v26 = vpop.f32.mrb[0].mxu1 }
  0xfd   :  { %216 = vst.msk [vmem:[#allocation2 + $0x28] sm:$0xff] %vm210_vm2, %v1331_v26  ;;  %v191_v27 = vpop.f32.mrb[1].mxu1 }
  0xfe   :  { %215 = vst.msk [vmem:[#allocation2 + $0x20] sm:$0xff] %vm210_vm2, %v191_v27 }
  0xff   :  { %v1325_v32 = vpop.f32.mrb[0].mxu0 }
 0x100   :  { %v1334_v33 = vpop.f32.mrb[2].mxu1  ;;  %212 = vst.msk [vmem:[#allocation2 + $0x8] sm:$0xff] %vm210_vm2, %v1325_v32  ;;  %v171_v34 = vpop.f32.mrb[1].mxu0 }
 0x101   :  { %218 = vst.msk [vmem:[#allocation2 + $0x38] sm:$0xff] %vm210_vm2, %v1334_v33  ;;  %v201_v35 = vpop.f32.mrb[3].mxu1  ;;  %211 = vst.msk [vmem:[#allocation2] sm:$0xff] %vm210_vm2, %v171_v34 }
 0x102   :  { %217 = vst.msk [vmem:[#allocation2 + $0x30] sm:$0xff] %vm210_vm2, %v201_v35 }
 0x103   :  { %v1328_v38 = vpop.f32.mrb[2].mxu0 }
 0x104   :  { %v1339_v39 = vpop.f32.mrb[4].mxu1  ;;  %214 = vst.msk [vmem:[#allocation2 + $0x18] sm:$0xff] %vm210_vm2, %v1328_v38  ;;  %v181_v40 = vpop.f32.mrb[3].mxu0  ;;  %v1811_v38 = vld [vmem:[%s1933_s7] sm:$0xf] }
 0x105   :  { %329 = vst.msk [vmem:[#allocation3 + $0x8] sm:$0xff] %vm210_vm2, %v1339_v39  ;;  %v289_v42 = vpop.f32.mrb[5].mxu1  ;;  %213 = vst.msk [vmem:[#allocation2 + $0x10] sm:$0xff] %vm210_vm2, %v181_v40 }
 0x106   :  { %328 = vst.msk [vmem:[#allocation3] sm:$0xff] %vm210_vm2, %v289_v42 }
 0x107   :  { %v371_v62 = vld [vmem:[#allocation2 + $0x8] sm:$0xff] }
 0x108   :  { %v358_v45 = vld [vmem:[#allocation2] sm:$0xff]  ;;  %v1342_v46 = vpop.f32.mrb[6].mxu1 }
 0x109   :  { %v363_v47 = vadd.f32 %v362_v41, %v358_v45  ;;  %331 = vst.msk [vmem:[#allocation3 + $0x18] sm:$0xff] %vm210_vm2, %v1342_v46  ;;  %v299_v48 = vpop.f32.mrb[7].mxu1  ;;  %v419_v46 = vld [vmem:[#allocation2 + $0x20] sm:$0xff] }
 0x10a   :  { %330 = vst.msk [vmem:[#allocation3 + $0x10] sm:$0xff] %vm210_vm2, %v299_v48 }
 0x10b   :  { %368 = vst.msk [vmem:[#allocation4] sm:$0xff] %vm210_vm2, %v363_v47  ;;  %v374_v53 = vmul.f32 %v1755_v28, %v363_v47  ;;  %v378_v54 = vmul.f32 %v1761_v29, %v363_v47  ;;  %v403_v34 = vld [vmem:[#allocation2 + $0x18] sm:$0xff] }
 0x10c   :  { %v1345_v50 = vpop.f32.mrb[8].mxu1  ;;  %v373_v63 = vld [vmem:[#allocation3 + $0x8] sm:$0xff]  ;;  %v387_v14 = vld [vmem:[#allocation2 + $0x10] sm:$0xff] }
 0x10d   :  { %v359_v51 = vld [vmem:[#allocation3] sm:$0xff]  ;;  %333 = vst.msk [vmem:[#allocation3 + $0x28] sm:$0xff] %vm210_vm2, %v1345_v50  ;;  %v309_v52 = vpop.f32.mrb[9].mxu1 }
 0x10e   :  { %v367_v55 = vadd.f32 %v366_v49, %v359_v51  ;;  %332 = vst.msk [vmem:[#allocation3 + $0x20] sm:$0xff] %vm210_vm2, %v309_v52 }
 0x110   :  { %v375_v56 = vmul.f32 %v1761_v29, %v367_v55  ;;  %v379_v57 = vmul.f32 %v1755_v28, %v367_v55  ;;  %369 = vst.msk [vmem:[#allocation5] sm:$0xff] %vm210_vm2, %v367_v55  ;;  %v1348_v58 = vpop.f32.mrb[10].mxu1  ;;  %v405_v35 = vld [vmem:[#allocation3 + $0x18] sm:$0xff] }
 0x111   :  { %335 = vst.msk [vmem:[#allocation3 + $0x38] sm:$0xff] %vm210_vm2, %v1348_v58  ;;  %v319_v59 = vpop.f32.mrb[11].mxu1  ;;  %v389_v15 = vld [vmem:[#allocation3 + $0x10] sm:$0xff] }
 0x112   :  { %v376_v60 = vsub.f32 %v374_v53, %v375_v56  ;;  %v380_v61 = vadd.f32 %v379_v57, %v378_v54  ;;  %334 = vst.msk [vmem:[#allocation3 + $0x30] sm:$0xff] %vm210_vm2, %v319_v59  ;;  %v435_v56 = vld [vmem:[#allocation2 + $0x28] sm:$0xff] }
 0x114   :  { %v377_v0 = vadd.f32 %v376_v60, %v371_v62  ;;  %v381_v3 = vadd.f32 %v380_v61, %v373_v63  ;;  %v437_v57 = vld [vmem:[#allocation3 + $0x28] sm:$0xff] }
 0x116   :  { %v390_v10 = vmul.f32 %v1755_v28, %v377_v0  ;;  %v391_v11 = vmul.f32 %v1761_v29, %v381_v3  ;;  %383 = vst.msk [vmem:[#allocation4 + $0x8] sm:$0xff] %vm210_vm2, %v377_v0  ;;  %385 = vst.msk [vmem:[#allocation5 + $0x8] sm:$0xff] %vm210_vm2, %v381_v3  ;;  %v394_v12 = vmul.f32 %v1761_v29, %v377_v0 }
 0x117   :  { %v395_v13 = vmul.f32 %v1755_v28, %v381_v3  ;;  %v492_v16 = vld [vmem:[#allocation5] sm:$0xff] }
 0x118   :  { %v392_v17 = vsub.f32 %v390_v10, %v391_v11  ;;  %1357 = vmatprep.mubr.msk.f32.mxu0 %vm210_vm2, %v492_v16 }
 0x119   :  { %v396_v18 = vadd.f32 %v395_v13, %v394_v12  ;;  %v453_v0 = vld [vmem:[#allocation3 + $0x30] sm:$0xff] }
 0x11a   :  { %v393_v22 = vadd.f32 %v392_v17, %v387_v14  ;;  %v451_v12 = vld [vmem:[#allocation2 + $0x30] sm:$0xff] }
 0x11b   :  { %v397_v23 = vadd.f32 %v396_v18, %v389_v15 }
 0x11c   :  { %v406_v25 = vmul.f32 %v1755_v28, %v393_v22  ;;  %v410_v26 = vmul.f32 %v1761_v29, %v393_v22  ;;  %399 = vst.msk [vmem:[#allocation4 + $0x10] sm:$0xff] %vm210_vm2, %v393_v22 }
 0x11d   :  { %v407_v27 = vmul.f32 %v1761_v29, %v397_v23  ;;  %v411_v30 = vmul.f32 %v1755_v28, %v397_v23  ;;  %401 = vst.msk [vmem:[#allocation5 + $0x10] sm:$0xff] %vm210_vm2, %v397_v23  ;;  %v493_v31 = vld [vmem:[#allocation5 + $0x8] sm:$0xff]  ;;  %v467_v23 = vld [vmem:[#allocation2 + $0x38] sm:$0xff] }
 0x11e   :  { %1358 = vmatmul.mubr.msk.f32.vlgmr.msra.gmra.mrb[4].mxu0 %vm210_vm2, %v493_v31 }
 0x11f   :  { %v408_v32 = vsub.f32 %v406_v25, %v407_v27  ;;  %v412_v33 = vadd.f32 %v411_v30, %v410_v26  ;;  %1450 = vmatpush3.bf16.msra.mxu0 %v1736_v19  ;;  %v421_v19 = vld [vmem:[#allocation3 + $0x20] sm:$0xff]  ;;  %v485_v30 = vld [vmem:[#allocation4 + $0x8] sm:$0xff] }
 0x120   :  { %1452 = vmatprep.subr.bf16.mxu0 %v1451_v24  ;;  %v484_v27 = vld [vmem:[#allocation4] sm:$0xff] }
 0x121   :  { %v409_v36 = vadd.f32 %v408_v32, %v403_v34  ;;  %v413_v37 = vadd.f32 %v412_v33, %v405_v35 }
 0x123   :  { %v422_v39 = vmul.f32 %v1755_v28, %v409_v36  ;;  %v423_v40 = vmul.f32 %v1761_v29, %v413_v37  ;;  %v426_v41 = vmul.f32 %v1761_v29, %v409_v36  ;;  %v427_v42 = vmul.f32 %v1755_v28, %v413_v37  ;;  %415 = vst.msk [vmem:[#allocation4 + $0x18] sm:$0xff] %vm210_vm2, %v409_v36  ;;  %v486_v31 = vld [vmem:[#allocation4 + $0x10] sm:$0xff] }
 0x124   :  { %417 = vst.msk [vmem:[#allocation5 + $0x18] sm:$0xff] %vm210_vm2, %v413_v37  ;;  %v494_v43 = vld [vmem:[#allocation5 + $0x10] sm:$0xff]  ;;  %1454 = vmatpush3.bf16.msra.mxu0 %v1451_v24  ;;  %v469_v24 = vld [vmem:[#allocation3 + $0x38] sm:$0xff] }
 0x125   :  { %v424_v44 = vsub.f32 %v422_v39, %v423_v40  ;;  %v428_v45 = vadd.f32 %v427_v42, %v426_v41  ;;  %1360 = vmatprep.mubr.msk.f32.mxu0 %vm210_vm2, %v494_v43  ;;  %1389 = vmatprep.subr.msk.mxu0 %vm101_vm0, %v1811_v38  ;;  %v1230_v40 = vld [vmem:[%s1935_s9] ss:$0 sm:$0xff] }
 0x127   :  { %v425_v47 = vadd.f32 %v424_v44, %v419_v46  ;;  %v429_v48 = vadd.f32 %v428_v45, %v421_v19 }
 0x129   :  { %v438_v49 = vmul.f32 %v1755_v28, %v425_v47  ;;  %v439_v50 = vmul.f32 %v1761_v29, %v429_v48  ;;  %v442_v51 = vmul.f32 %v1761_v29, %v425_v47  ;;  %v443_v52 = vmul.f32 %v1755_v28, %v429_v48  ;;  %431 = vst.msk [vmem:[#allocation4 + $0x20] sm:$0xff] %vm210_vm2, %v425_v47 }
 0x12a   :  { %433 = vst.msk [vmem:[#allocation5 + $0x20] sm:$0xff] %vm210_vm2, %v429_v48  ;;  %v487_v32 = vld [vmem:[#allocation4 + $0x18] sm:$0xff] }
 0x12b   :  { %v495_v53 = vld [vmem:[#allocation5 + $0x18] sm:$0xff]  ;;  %v440_v54 = vsub.f32 %v438_v49, %v439_v50  ;;  %v444_v55 = vadd.f32 %v443_v52, %v442_v51 }
 0x12c   :  { %1361 = vmatmul.mubr.msk.f32.gmra.mrb[6].mxu0 %vm210_vm2, %v495_v53 }
 0x12d   :  { %v441_v58 = vadd.f32 %v440_v54, %v435_v56  ;;  %v445_v59 = vadd.f32 %v444_v55, %v437_v57 }
 0x12f   :  { %v454_v60 = vmul.f32 %v1755_v28, %v441_v58  ;;  %v455_v61 = vmul.f32 %v1761_v29, %v445_v59  ;;  %v458_v62 = vmul.f32 %v1761_v29, %v441_v58  ;;  %v459_v63 = vmul.f32 %v1755_v28, %v445_v59  ;;  %447 = vst.msk [vmem:[#allocation4 + $0x28] sm:$0xff] %vm210_vm2, %v441_v58 }
 0x130   :  { %449 = vst.msk [vmem:[#allocation5 + $0x28] sm:$0xff] %vm210_vm2, %v445_v59  ;;  %v488_v33 = vld [vmem:[#allocation4 + $0x20] sm:$0xff] }
 0x131   :  { %v496_v3 = vld [vmem:[#allocation5 + $0x20] sm:$0xff]  ;;  %v456_v10 = vsub.f32 %v454_v60, %v455_v61  ;;  %v460_v11 = vadd.f32 %v459_v63, %v458_v62 }
 0x132   :  { %1363 = vmatprep.mubr.msk.f32.mxu0 %vm210_vm2, %v496_v3 }
 0x133   :  { %v457_v13 = vadd.f32 %v456_v10, %v451_v12  ;;  %v461_v14 = vadd.f32 %v460_v11, %v453_v0  ;;  %v1239_v0 = vld [vmem:[#allocation10] ss:$0 sm:$0xff] }
 0x135   :  { %v470_v15 = vmul.f32 %v1755_v28, %v457_v13  ;;  %v471_v16 = vmul.f32 %v1761_v29, %v461_v14  ;;  %v474_v17 = vmul.f32 %v1761_v29, %v457_v13  ;;  %v475_v18 = vmul.f32 %v1755_v28, %v461_v14  ;;  %463 = vst.msk [vmem:[#allocation4 + $0x30] sm:$0xff] %vm210_vm2, %v457_v13 }
 0x136   :  { %465 = vst.msk [vmem:[#allocation5 + $0x30] sm:$0xff] %vm210_vm2, %v461_v14  ;;  %v489_v34 = vld [vmem:[#allocation4 + $0x28] sm:$0xff] }
 0x137   :  { %v497_v20 = vld [vmem:[#allocation5 + $0x28] sm:$0xff]  ;;  %v472_v21 = vsub.f32 %v470_v15, %v471_v16  ;;  %v476_v22 = vadd.f32 %v475_v18, %v474_v17 }
 0x138   :  { %1364 = vmatmul.mubr.msk.f32.gmra.mrb[8].mxu0 %vm210_vm2, %v497_v20 }
 0x139   :  { %v477_v25 = vadd.f32 %v476_v22, %v469_v24  ;;  %v473_v26 = vadd.f32 %v472_v21, %v467_v23 }
 0x13b   :  { %481 = vst.msk [vmem:[#allocation5 + $0x38] sm:$0xff] %vm210_vm2, %v477_v25  ;;  %483 = vst.msk [vmem:[#allocation7] sm:$0xff] %vm210_vm2, %v477_v25 }
 0x13c   :  { %479 = vst.msk [vmem:[#allocation4 + $0x38] sm:$0xff] %vm210_vm2, %v473_v26  ;;  %482 = vst.msk [vmem:[#allocation6] sm:$0xff] %vm210_vm2, %v473_v26  ;;  %v490_v35 = vld [vmem:[#allocation4 + $0x30] sm:$0xff] }
 0x13d   :  { %v498_v28 = vld [vmem:[#allocation5 + $0x30] sm:$0xff] }
 0x13e   :  { %1366 = vmatprep.mubr.msk.f32.mxu0 %vm210_vm2, %v498_v28 }
 0x142   :  { %v499_v29 = vld [vmem:[#allocation5 + $0x38] sm:$0xff] }
 0x143   :  { %1367 = vmatmul.mubr.msk.f32.gmra.mrb[10].mxu0 %vm210_vm2, %v499_v29  ;;  %v491_v36 = vld [vmem:[#allocation4 + $0x38] sm:$0xff] }
 0x144   :  { %1377 = vmatprep.mubr.msk.f32.mxu0 %vm210_vm2, %v484_v27 }
 0x147   :  { %1378 = vmatmul.mubr.msk.f32.vlgmr.msra.gmra.mrb[4].mxu0 %vm210_vm2, %v485_v30 }
 0x148   :  { %1380 = vmatprep.mubr.msk.f32.mxu0 %vm210_vm2, %v486_v31  ;;  %1390 = vmatpush3.msk.msra.mxu0 %vm101_vm0, %v1811_v38 }
 0x14b   :  { %1381 = vmatmul.mubr.msk.f32.gmra.mrb[6].mxu0 %vm210_vm2, %v487_v32 }
 0x14c   :  { %1383 = vmatprep.mubr.msk.f32.mxu0 %vm210_vm2, %v488_v33 }
 0x14f   :  { %1384 = vmatmul.mubr.msk.f32.gmra.mrb[8].mxu0 %vm210_vm2, %v489_v34 }
 0x150   :  { %1386 = vmatprep.mubr.msk.f32.mxu0 %vm210_vm2, %v490_v35 }
 0x153   :  { %1387 = vmatmul.mubr.msk.f32.gmra.mrb[10].mxu0 %vm210_vm2, %v491_v36 }
 0x154   :  { %1391 = vmatprep.mubr.msk.f32.mxu0 %vm76_vm1, %v1661_v5  ;;  %v1031_v5 = vld [vmem:[#allocation8] sm:$0xff] }
 0x157   :  { %1392 = vmatmul.mubr.msk.f32.vlgmr.msra.gmra.mrb[4].mxu0 %vm76_vm1, %v1669_v6  ;;  %v1032_v6 = vld [vmem:[#allocation8 + $0x8] sm:$0xff] }
 0x158   :  { %1394 = vmatprep.mubr.msk.f32.mxu0 %vm76_vm1, %v1682_v8  ;;  %v1463_v37 = vpack.c.bf16 %v1032_v6, %v1031_v5 }
 0x15a   :  { %1464 = vmatprep.subr.bf16.mxu1 %v1463_v37 }
 0x15b   :  { %1395 = vmatmul.mubr.msk.f32.gmra.mrb[6].mxu0 %vm76_vm1, %v1696_v9 }
 0x15c   :  { %1397 = vmatprep.mubr.msk.f32.mxu0 %vm76_vm1, %v1638_v1 }
 0x15f   :  { %1398 = vmatmul.mubr.msk.f32.gmra.mrb[8].mxu0 %vm76_vm1, %v1643_v2 }
 0x160   :  { %1400 = vmatprep.mubr.msk.f32.mxu0 %vm76_vm1, %v1654_v4 }
 0x163   :  { %1401 = vmatmul.mubr.msk.f32.gmra.mrb[10].mxu0 %vm76_vm1, %v1677_v7 }
 0x22a   :  { %v1393_v8 = vpop.f32.mrb[4].mxu0 }
 0x22b   :  { %v836_v38 = vpop.f32.mrb[5].mxu0 }
 0x22c   :  { %1411 = vmatprep.mubr.msk.f32.mxu1 %vm210_vm2, %v836_v38 }
 0x22d   :  { %1412 = vmatmul.mubr.msk.f32.vlgmr.msra.gmra.mrb[12].mxu1 %vm210_vm2, %v1393_v8 }
 0x22e   :  { %v1396_v1 = vpop.f32.mrb[6].mxu0  ;;  %1466 = vmatpush3.bf16.msra.mxu1 %v1463_v37 }
 0x22f   :  { %v846_v9 = vpop.f32.mrb[7].mxu0 }
 0x230   :  { %1414 = vmatprep.mubr.msk.f32.mxu1 %vm210_vm2, %v846_v9 }
 0x231   :  { %1415 = vmatmul.mubr.msk.f32.gmra.mrb[14].mxu1 %vm210_vm2, %v1396_v1 }
 0x232   :  { %v1399_v2 = vpop.f32.mrb[8].mxu0 }
 0x233   :  { %v856_v4 = vpop.f32.mrb[9].mxu0 }
 0x234   :  { %1417 = vmatprep.mubr.msk.f32.mxu1 %vm210_vm2, %v856_v4 }
 0x235   :  { %1418 = vmatmul.mubr.msk.f32.gmra.mrb[16].mxu1 %vm210_vm2, %v1399_v2 }
 0x236   :  { %v1402_v7 = vpop.f32.mrb[10].mxu0 }
 0x237   :  { %v866_v39 = vpop.f32.mrb[11].mxu0 }
 0x238   :  { %1420 = vmatprep.mubr.msk.f32.mxu1 %vm210_vm2, %v866_v39 }
 0x239   :  { %1421 = vmatmul.mubr.msk.f32.gmra.mrb[18].mxu1 %vm210_vm2, %v1402_v7 }
 0x300   :  { %v1413_v41 = vpop.f32.mrb[12].mxu1 }
 0x301   :  { %v990_v42 = vadd.f32 %v1413_v41, %v1230_v40  ;;  %v984_v19 = vpop.f32.mrb[13].mxu1 }
 0x302   :  { %v985_v43 = vadd.f32 %v1230_v40, %v984_v19 }
 0x303   :  { %v1024_v46 = vmax.f32 %v990_v42, 0.0 }
 0x304   :  { %v1023_v44 = vmax.f32 %v985_v43, 0.0  ;;  %v1416_v45 = vpop.f32.mrb[14].mxu1 }
 0x305   :  { %v1000_v47 = vadd.f32 %v1416_v45, %v1230_v40  ;;  %v994_v48 = vpop.f32.mrb[15].mxu1 }
 0x306   :  { %v995_v49 = vadd.f32 %v1230_v40, %v994_v48  ;;  %1427 = vmatprep.mubr.msk.f32.mxu1 %vm1040_vm3, %v1023_v44 }
 0x307   :  { %1428 = vmatmul.mubr.msk.f32.vlgmr.msra.gmra.mrb[20].mxu1 %vm1040_vm3, %v1024_v46  ;;  %v1026_v52 = vmax.f32 %v1000_v47, 0.0 }
 0x308   :  { %v1025_v50 = vmax.f32 %v995_v49, 0.0  ;;  %v1419_v51 = vpop.f32.mrb[16].mxu1 }
 0x309   :  { %v1010_v53 = vadd.f32 %v1419_v51, %v1230_v40  ;;  %v1004_v54 = vpop.f32.mrb[17].mxu1 }
 0x30a   :  { %v1005_v55 = vadd.f32 %v1230_v40, %v1004_v54  ;;  %1430 = vmatprep.mubr.msk.f32.mxu1 %vm1040_vm3, %v1025_v50 }
 0x30b   :  { %1431 = vmatmul.mubr.msk.f32.gmra.mrb[22].mxu1 %vm1040_vm3, %v1026_v52  ;;  %v1028_v58 = vmax.f32 %v1010_v53, 0.0 }
 0x30c   :  { %v1027_v56 = vmax.f32 %v1005_v55, 0.0  ;;  %v1422_v57 = vpop.f32.mrb[18].mxu1 }
 0x30d   :  { %v1020_v59 = vadd.f32 %v1422_v57, %v1230_v40  ;;  %v1014_v60 = vpop.f32.mrb[19].mxu1 }
 0x30e   :  { %v1015_v61 = vadd.f32 %v1230_v40, %v1014_v60  ;;  %1433 = vmatprep.mubr.msk.f32.mxu1 %vm1040_vm3, %v1027_v56 }
 0x30f   :  { %1434 = vmatmul.mubr.msk.f32.gmra.mrb[24].mxu1 %vm1040_vm3, %v1028_v58  ;;  %v1030_v63 = vmax.f32 %v1020_v59, 0.0 }
 0x310   :  { %v1029_v62 = vmax.f32 %v1015_v61, 0.0 }
 0x312   :  { %1436 = vmatprep.mubr.msk.f32.mxu1 %vm1040_vm3, %v1029_v62 }
 0x313   :  { %1437 = vmatmul.mubr.msk.f32.gmra.mrb[26].mxu1 %vm1040_vm3, %v1030_v63 }
 0x3da   :  { %v1429_v3 = vpop.f32.mrb[20].mxu1 }
 0x3db   :  { %v1137_v10 = vadd.f32 %v1429_v3, %v1239_v0  ;;  %v1131_v11 = vpop.f32.mrb[21].mxu1 }
 0x3dc   :  { %v1132_v12 = vadd.f32 %v1239_v0, %v1131_v11 }
 0x3dd   :  { %1172 = vst.msk [vmem:[%s1938_s12 + $0x8] sm:$0xff] %vm1170_vm4, %v1137_v10 }
 0x3de   :  { %1171 = vst.msk [vmem:[%s1938_s12] sm:$0xff] %vm1170_vm4, %v1132_v12  ;;  %v1432_v13 = vpop.f32.mrb[22].mxu1 }
 0x3df   :  { %v1147_v14 = vadd.f32 %v1432_v13, %v1239_v0  ;;  %v1141_v15 = vpop.f32.mrb[23].mxu1 }
 0x3e0   :  { %v1142_v16 = vadd.f32 %v1239_v0, %v1141_v15 }
 0x3e1   :  { %1174 = vst.msk [vmem:[%s1938_s12 + $0x18] sm:$0xff] %vm1170_vm4, %v1147_v14 }
 0x3e2   :  { %1173 = vst.msk [vmem:[%s1938_s12 + $0x10] sm:$0xff] %vm1170_vm4, %v1142_v16  ;;  %v1435_v17 = vpop.f32.mrb[24].mxu1 }
 0x3e3   :  { %v1157_v18 = vadd.f32 %v1435_v17, %v1239_v0  ;;  %v1151_v20 = vpop.f32.mrb[25].mxu1 }
 0x3e4   :  { %v1152_v21 = vadd.f32 %v1239_v0, %v1151_v20 }
 0x3e5   :  { %1176 = vst.msk [vmem:[%s1938_s12 + $0x28] sm:$0xff] %vm1170_vm4, %v1157_v18 }
 0x3e6   :  { %1175 = vst.msk [vmem:[%s1938_s12 + $0x20] sm:$0xff] %vm1170_vm4, %v1152_v21  ;;  %v1438_v22 = vpop.f32.mrb[26].mxu1 }
 0x3e7   :  { %v1167_v23 = vadd.f32 %v1438_v22, %v1239_v0  ;;  %v1161_v24 = vpop.f32.mrb[27].mxu1 }
 0x3e8   :  { %v1162_v25 = vadd.f32 %v1239_v0, %v1161_v24 }
 0x3e9   :  { %1178 = vst.msk [vmem:[%s1938_s12 + $0x38] sm:$0xff] %vm1170_vm4, %v1167_v23 }
 0x3ea   :  { %1177 = vst.msk [vmem:[%s1938_s12 + $0x30] sm:$0xff] %vm1170_vm4, %v1162_v25 }
 0x3eb   :  { %1183 = vsyncpa [#allocation9], 1 }
 0x3ec   :  { %1184 = vsyncpa [#allocation11], 1 }

</bundles_post_ra>
